<compile_context>
chip_gen: v7x
topology: tpu7x:2x2x1
jax: 0.10.0
libtpu: 0.0.40
codegen_flags: <defaults>
</compile_context>

<pallas_src>
import functools

import jax
import jax.numpy as jnp
from jax.experimental import pallas as pl
from jax.experimental.pallas import tpu as pltpu

_SINGLE_TILE_MAX_B = 256       # above this, tile the batch (lets v7x use both TCs)
_MAX_TILE_B = 4096             # amortizes ~0.35us/step grid overhead
_PSUM_ROWS, _PSUM_LANES = 8, 128   # fully (8,128)-aligned per-tile partial-sum block


def _vmem_capacity_bytes():
    try:
        return int(pltpu.get_tpu_info().vmem_capacity_bytes)
    except Exception:
        return 64 * 1024 * 1024   # conservative (v7x-sized) fallback


def _round_up(x, m):
    return ((x + m - 1) // m) * m


# ---------------------------------------------------------------------------
# Kernels
# ---------------------------------------------------------------------------
def _features(x, w1, b1, w2, b2, w3, b3):
    """3 x (Linear + ReLU). Matmuls run in the weights' dtype on the MXU with
    f32 accumulation; bias-add / ReLU stay in f32 (no bf16 VPU ops -> v5e OK).
    The x cast happens here, per-tile in VMEM, not as a wrapper-side HBM pass."""
    cd = w1.dtype
    h = jnp.dot(x.astype(cd), w1, preferred_element_type=jnp.float32) + b1
    h = jnp.maximum(h, 0.0)
    h = jnp.dot(h.astype(cd), w2, preferred_element_type=jnp.float32) + b2
    h = jnp.maximum(h, 0.0)
    h = jnp.dot(h.astype(cd), w3, preferred_element_type=jnp.float32) + b3
    h = jnp.maximum(h, 0.0)
    return h


def _plain_kernel(x_ref, w1_ref, b1_ref, w2_ref, b2_ref, w3_ref, b3_ref,
                  wh_ref, bh_ref, out_ref):
    """Features + action head, written directly as a narrow (tile_b, n_action)
    block (8-lane masked store is far cheaper than 16x padded writeback)."""
    h = _features(x_ref[...], w1_ref[...], b1_ref[...], w2_ref[...], b2_ref[...],
                  w3_ref[...], b3_ref[...])
    wh = wh_ref[...]
    out = jnp.dot(h.astype(wh.dtype), wh,
                  preferred_element_type=jnp.float32) + bh_ref[...]
    out_ref[...] = out.astype(out_ref.dtype)


def _dueling_tiled_kernel(x_ref, w1_ref, b1_ref, w2_ref, b2_ref, w3_ref, b3_ref,
                          wh_ref, bh_ref, pre_ref, psum_ref, *, n_action,
                          batch_size):
    """Tiled dueling forward.  Emits the un-centered output (state_v + action_v)
    plus a per-tile f32 partial sum of action_v so the global torch.mean can be
    applied with a single scalar subtract outside the kernel."""
    h = _features(x_ref[...], w1_ref[...], b1_ref[...], w2_ref[...], b2_ref[...],
                  w3_ref[...], b3_ref[...])
    wh = wh_ref[...]
    head = jnp.dot(h.astype(wh.dtype), wh,
                   preferred_element_type=jnp.float32) + bh_ref[...]
    action_v = head[:, :n_action]
    state_v = head[:, n_action:n_action + 1]
    pre_ref[...] = (state_v + action_v).astype(pre_ref.dtype)

    tile_rows = action_v.shape[0]
    if batch_size % tile_rows == 0:
        psum = jnp.sum(action_v)
    else:
        # Ragged last tile: mask out-of-range rows so garbage in the padded
        # input block cannot corrupt the global mean.
        rows = (jax.lax.broadcasted_iota(jnp.int32, action_v.shape, 0)
                + pl.program_id(0) * tile_rows)
        psum = jnp.sum(jnp.where(rows < batch_size, action_v, 0.0))
    psum_ref[...] = jnp.zeros((_PSUM_ROWS, _PSUM_LANES), jnp.float32) + psum


def _dueling_fused_kernel(x_ref, w1_ref, b1_ref, w2_ref, b2_ref, w3_ref, b3_ref,
                          wh_ref, bh_ref, out_ref, *, n_action, inv_count):
    """Single-tile dueling forward: whole batch resident in VMEM, so the global
    torch.mean(action_v) (over batch AND action dims) is computed exactly
    in-kernel and only the (B, n_action) result touches HBM."""
    h = _features(x_ref[...], w1_ref[...], b1_ref[...], w2_ref[...], b2_ref[...],
                  w3_ref[...], b3_ref[...])
    wh = wh_ref[...]
    head = jnp.dot(h.astype(wh.dtype), wh,
                   preferred_element_type=jnp.float32) + bh_ref[...]
    action_v = head[:, :n_action]
    state_v = head[:, n_action:n_action + 1]
    action_v_mean = jnp.sum(action_v) * inv_count      # reciprocal folded at trace
    out_ref[...] = (state_v + (action_v - action_v_mean)).astype(out_ref.dtype)


# ---------------------------------------------------------------------------
# One-time parameter preparation (hoisted out of the per-step forward)
# ---------------------------------------------------------------------------
def prepare_params(params, use_dueling_net, compute_dtype=jnp.float32):
    """Fuse the advantage|state heads and cast matmul operands ONCE per weight
    update so the hot forward path never re-streams weights for concat/convert.
    compute_dtype=jnp.bfloat16 is valid on all generations (only the MXU sees
    bf16; VPU math stays f32)."""
    cd, f32 = compute_dtype, jnp.float32
    if use_dueling_net:
        wh = jnp.concatenate([params["wa"], params["ws"]], axis=1)   # (mid, A+1)
        bh = jnp.concatenate([params["ba"], params["bs"]], axis=1)   # (1, A+1)
    else:
        wh, bh = params["wa"], params["ba"]
    return (params["w1"].astype(cd), params["b1"].astype(f32),
            params["w2"].astype(cd), params["b2"].astype(f32),
            params["w3"].astype(cd), params["b3"].astype(f32),
            wh.astype(cd), bh.astype(f32))


# ---------------------------------------------------------------------------
# Forward wrapper
# ---------------------------------------------------------------------------
@functools.partial(jax.jit, static_argnames=("use_dueling_net",))
def net_forward(x, prepared, use_dueling_net):
    """prepared: output of prepare_params (weights (in,out), biases (1,out))."""
    w1, b1, w2, b2, w3, b3, wh, bh = prepared
    B, n_state = x.shape
    mid = w1.shape[1]
    n_head = wh.shape[1]
    n_action = n_head - 1 if use_dueling_net else n_head
    f32 = jnp.float32

    # --- Per-generation VMEM budget (v5e/v6e: 128 MiB, v7x: 64 MiB) ----------
    vmem_cap = _vmem_capacity_bytes()
    vmem_limit = int(vmem_cap * 0.85)        # explicit scoped-VMEM limit
    budget = int(vmem_limit * 0.80)          # headroom for compiler temporaries

    # --- Small-batch dueling: everything (incl. global mean) in ONE kernel ---
    if use_dueling_net and B <= _SINGLE_TILE_MAX_B:
        vmem = pl.BlockSpec(memory_space=pltpu.MemorySpace.VMEM)
        kernel = functools.partial(_dueling_fused_kernel, n_action=n_action,
                                   inv_count=1.0 / (B * n_action))
        return pl.pallas_call(
            kernel,
            out_shape=jax.ShapeDtypeStruct((B, n_action), f32),
            in_specs=[vmem] * 9,
            out_specs=vmem,
            compiler_params=pltpu.CompilerParams(vmem_limit_bytes=vmem_limit),
        )(x, w1, b1, w2, b2, w3, b3, wh, bh)

    # --- Batch-tiled path: derive tile_b from the VMEM budget -----------------
    cd_bytes = jnp.dtype(w1.dtype).itemsize
    x_bytes = jnp.dtype(x.dtype).itemsize
    w_bytes = sum(a.size * jnp.dtype(a.dtype).itemsize for a in prepared)
    per_row = (2 * n_state * x_bytes            # double-buffered x tile
               + 2 * n_head * 4                 # double-buffered output tile
               + 4 * mid * 4 + mid * cd_bytes)  # live f32 activations + cast copy
    tile_cap = max(8, (budget - 2 * w_bytes) // per_row)   # weights 2x-buffered
    min_tiles = 2 if B > _SINGLE_TILE_MAX_B else 1          # let both v7x TCs work
    tile_b = min(_MAX_TILE_B, (tile_cap // 8) * 8,
                 _round_up(pl.cdiv(B, min_tiles), 8))
    tile_b = max(tile_b, 8)
    num_tiles = pl.cdiv(B, tile_b)

    x_spec = pl.BlockSpec((tile_b, n_state), lambda i: (i, 0))
    # Constant index maps -> weights are DMA'd once and stay VMEM-resident.
    w_specs = [pl.BlockSpec(w.shape, lambda i: (0, 0)) for w in prepared]
    cparams = pltpu.CompilerParams(dimension_semantics=("parallel",),
                                   vmem_limit_bytes=vmem_limit)

    if not use_dueling_net:
        return pl.pallas_call(
            _plain_kernel,
            out_shape=jax.ShapeDtypeStruct((B, n_action), f32),
            grid_spec=pltpu.PrefetchScalarGridSpec(
                num_scalar_prefetch=0, grid=(num_tiles,),
                in_specs=[x_spec] + w_specs,
                out_specs=pl.BlockSpec((tile_b, n_action), lambda i: (i, 0))),
            compiler_params=cparams,
        )(x, *prepared)

    kernel = functools.partial(_dueling_tiled_kernel, n_action=n_action,
                               batch_size=B)
    pre_out, psums = pl.pallas_call(
        kernel,
        out_shape=(jax.ShapeDtypeStruct((B, n_action), f32),
                   jax.ShapeDtypeStruct((num_tiles * _PSUM_ROWS, _PSUM_LANES), f32)),
        grid_spec=pltpu.PrefetchScalarGridSpec(
            num_scalar_prefetch=0, grid=(num_tiles,),
            in_specs=[x_spec] + w_specs,
            out_specs=[pl.BlockSpec((tile_b, n_action), lambda i: (i, 0)),
                       pl.BlockSpec((_PSUM_ROWS, _PSUM_LANES), lambda i: (i, 0))]),
        compiler_params=cparams,
    )(x, *prepared)

    # Global torch.mean(action_v) (over batch AND action dims) from the per-tile
    # f32 partial sums; the only remaining epilogue is one scalar subtract.
    partials = psums.reshape(num_tiles, _PSUM_ROWS, _PSUM_LANES)[:, 0, 0]
    action_v_mean = jnp.sum(partials) * (1.0 / (B * n_action))
    return pre_out - action_v_mean


# ---------------------------------------------------------------------------
# Deterministic parameter init (mirrors Net.init_weights: N(0, 0.2), bias=0)
# ---------------------------------------------------------------------------
def init_params(key, n_state, n_action, mid):
    ks = jax.random.split(key, 5)
    std = 0.2

    def lin(k, fan_in, fan_out):
        # stored as (in, out) so kernels compute x @ W
        w = std * jax.random.normal(k, (fan_in, fan_out), jnp.float32)
        b = jnp.zeros((1, fan_out), jnp.float32)
        return w, b

    w1, b1 = lin(ks[0], n_state, mid)
    w2, b2 = lin(ks[1], mid, mid)
    w3, b3 = lin(ks[2], mid, mid)
    wa, ba = lin(ks[3], mid, n_action)
    ws, bs = lin(ks[4], mid, 1)
    return dict(w1=w1, b1=b1, w2=w2, b2=b2, w3=w3, b3=b3,
                wa=wa, ba=ba, ws=ws, bs=bs)


# Pure-JAX reference for sanity checks.
def net_forward_ref(x, p, use_dueling_net):
    h = jax.nn.relu(x @ p["w1"] + p["b1"])
    h = jax.nn.relu(h @ p["w2"] + p["b2"])
    h = jax.nn.relu(h @ p["w3"] + p["b3"])
    action_v = h @ p["wa"] + p["ba"]
    if not use_dueling_net:
        return action_v
    state_v = h @ p["ws"] + p["bs"]
    return state_v + (action_v - jnp.mean(action_v))


if __name__ == "__main__":
    n_state, mid, n_action = 16, 32, 8
    key = jax.random.PRNGKey(0)
    k_p, k_x1, k_x2 = jax.random.split(key, 3)
    params = init_params(k_p, n_state, n_action, mid)

    # One-time weight prep (hoisted out of the per-step forward).
    prep_duel = prepare_params(params, use_dueling_net=True)
    prep_plain = prepare_params(params, use_dueling_net=False)

    # --- Small batch: fully fused single-tile dueling kernel -----------------
    B = 8
    x = jax.random.normal(k_x1, (B, n_state), jnp.float32)

    out_d = jax.block_until_ready(net_forward(x, prep_duel, use_dueling_net=True))
    ref_d = net_forward_ref(x, params, True)
    assert out_d.shape == (B, n_action)
    assert jnp.allclose(out_d, ref_d, atol=1e-3, rtol=1e-3), "dueling (small B)"

    out_p = jax.block_until_ready(net_forward(x, prep_plain, use_dueling_net=False))
    ref_p = net_forward_ref(x, params, False)
    assert out_p.shape == (B, n_action)
    assert jnp.allclose(out_p, ref_p, atol=1e-3, rtol=1e-3), "plain (small B)"

    # --- Larger, ragged batch: exercises the tiled 'parallel' grid (2 tiles,
    #     masked partial last tile) and the partial-sum dueling epilogue -------
    B2 = 600
    x2 = jax.random.normal(k_x2, (B2, n_state), jnp.float32)

    out_d2 = jax.block_until_ready(net_forward(x2, prep_duel, use_dueling_net=True))
    ref_d2 = net_forward_ref(x2, params, True)
    assert out_d2.shape == (B2, n_action)
    assert jnp.allclose(out_d2, ref_d2, atol=1e-3, rtol=1e-3), "dueling (tiled)"

    out_p2 = jax.block_until_ready(net_forward(x2, prep_plain, use_dueling_net=False))
    ref_p2 = net_forward_ref(x2, params, False)
    assert jnp.allclose(out_p2, ref_p2, atol=1e-3, rtol=1e-3), "plain (tiled)"

    # --- bf16 compute path (valid on v5e/v6e/v7x: only the MXU sees bf16) -----
    prep_bf16 = prepare_params(params, use_dueling_net=True,
                               compute_dtype=jnp.bfloat16)
    out_bf16 = jax.block_until_ready(
        net_forward(x2, prep_bf16, use_dueling_net=True))
    assert out_bf16.shape == (B2, n_action)
    assert jnp.allclose(out_bf16, ref_d2, atol=1e-1, rtol=1e-1), "dueling (bf16)"

    print("KERNEL_OK")
</pallas_src>

<mosaic_0001>
module attributes {stable_mosaic.version = 11 : i64} {
  func.func @_dueling_fused_kernel(%arg0: memref<8x16xf32, #tpu.memory_space<vmem>>, %arg1: memref<16x32xf32, #tpu.memory_space<vmem>>, %arg2: memref<1x32xf32, #tpu.memory_space<vmem>>, %arg3: memref<32x32xf32, #tpu.memory_space<vmem>>, %arg4: memref<1x32xf32, #tpu.memory_space<vmem>>, %arg5: memref<32x32xf32, #tpu.memory_space<vmem>>, %arg6: memref<1x32xf32, #tpu.memory_space<vmem>>, %arg7: memref<32x9xf32, #tpu.memory_space<vmem>>, %arg8: memref<1x9xf32, #tpu.memory_space<vmem>>, %arg9: memref<8x8xf32, #tpu.memory_space<vmem>>) attributes {dimension_semantics = [], scalar_prefetch = 0 : i64, scratch_operands = 0 : i64, tpu.core_type = #tpu.core_type<tc>} {
    %c0 = arith.constant 0 : index
    %c0_0 = arith.constant 0 : index
    %0 = vector.load %arg0[%c0, %c0_0] : memref<8x16xf32, #tpu.memory_space<vmem>>, vector<8x16xf32>
    %c0_1 = arith.constant 0 : index
    %c0_2 = arith.constant 0 : index
    %1 = vector.load %arg1[%c0_1, %c0_2] : memref<16x32xf32, #tpu.memory_space<vmem>>, vector<16x32xf32>
    %c0_3 = arith.constant 0 : index
    %c0_4 = arith.constant 0 : index
    %2 = vector.load %arg2[%c0_3, %c0_4] : memref<1x32xf32, #tpu.memory_space<vmem>>, vector<1x32xf32>
    %c0_5 = arith.constant 0 : index
    %c0_6 = arith.constant 0 : index
    %3 = vector.load %arg3[%c0_5, %c0_6] : memref<32x32xf32, #tpu.memory_space<vmem>>, vector<32x32xf32>
    %c0_7 = arith.constant 0 : index
    %c0_8 = arith.constant 0 : index
    %4 = vector.load %arg4[%c0_7, %c0_8] : memref<1x32xf32, #tpu.memory_space<vmem>>, vector<1x32xf32>
    %c0_9 = arith.constant 0 : index
    %c0_10 = arith.constant 0 : index
    %5 = vector.load %arg5[%c0_9, %c0_10] : memref<32x32xf32, #tpu.memory_space<vmem>>, vector<32x32xf32>
    %c0_11 = arith.constant 0 : index
    %c0_12 = arith.constant 0 : index
    %6 = vector.load %arg6[%c0_11, %c0_12] : memref<1x32xf32, #tpu.memory_space<vmem>>, vector<1x32xf32>
    %cst = arith.constant dense<0.000000e+00> : vector<8x32xf32>
    %7 = tpu.matmul %0, %1, %cst {dimension_numbers = #tpu.dot_dimension_numbers<[1], [0], [0], [1], [0, 0, 1, 1], [], []>} : vector<8x16xf32>, vector<16x32xf32>, vector<8x32xf32> -> vector<8x32xf32>
    %8 = vector.broadcast %2 : vector<1x32xf32> to vector<8x32xf32>
    %9 = arith.addf %7, %8 : vector<8x32xf32>
    %cst_13 = arith.constant 0.000000e+00 : f32
    %10 = vector.broadcast %cst_13 : f32 to vector<8x32xf32>
    %11 = arith.maximumf %9, %10 : vector<8x32xf32>
    %cst_14 = arith.constant dense<0.000000e+00> : vector<8x32xf32>
    %12 = tpu.matmul %11, %3, %cst_14 {dimension_numbers = #tpu.dot_dimension_numbers<[1], [0], [0], [1], [0, 0, 1, 1], [], []>} : vector<8x32xf32>, vector<32x32xf32>, vector<8x32xf32> -> vector<8x32xf32>
    %13 = vector.broadcast %4 : vector<1x32xf32> to vector<8x32xf32>
    %14 = arith.addf %12, %13 : vector<8x32xf32>
    %cst_15 = arith.constant 0.000000e+00 : f32
    %15 = vector.broadcast %cst_15 : f32 to vector<8x32xf32>
    %16 = arith.maximumf %14, %15 : vector<8x32xf32>
    %cst_16 = arith.constant dense<0.000000e+00> : vector<8x32xf32>
    %17 = tpu.matmul %16, %5, %cst_16 {dimension_numbers = #tpu.dot_dimension_numbers<[1], [0], [0], [1], [0, 0, 1, 1], [], []>} : vector<8x32xf32>, vector<32x32xf32>, vector<8x32xf32> -> vector<8x32xf32>
    %18 = vector.broadcast %6 : vector<1x32xf32> to vector<8x32xf32>
    %19 = arith.addf %17, %18 : vector<8x32xf32>
    %cst_17 = arith.constant 0.000000e+00 : f32
    %20 = vector.broadcast %cst_17 : f32 to vector<8x32xf32>
    %21 = arith.maximumf %19, %20 : vector<8x32xf32>
    %c0_18 = arith.constant 0 : index
    %c0_19 = arith.constant 0 : index
    %22 = vector.load %arg7[%c0_18, %c0_19] : memref<32x9xf32, #tpu.memory_space<vmem>>, vector<32x9xf32>
    %cst_20 = arith.constant dense<0.000000e+00> : vector<8x9xf32>
    %23 = tpu.matmul %21, %22, %cst_20 {dimension_numbers = #tpu.dot_dimension_numbers<[1], [0], [0], [1], [0, 0, 1, 1], [], []>} : vector<8x32xf32>, vector<32x9xf32>, vector<8x9xf32> -> vector<8x9xf32>
    %c0_21 = arith.constant 0 : index
    %c0_22 = arith.constant 0 : index
    %24 = vector.load %arg8[%c0_21, %c0_22] : memref<1x9xf32, #tpu.memory_space<vmem>>, vector<1x9xf32>
    %25 = vector.broadcast %24 : vector<1x9xf32> to vector<8x9xf32>
    %26 = arith.addf %23, %25 : vector<8x9xf32>
    %27 = vector.extract_strided_slice %26 {offsets = [0, 0], sizes = [8, 8], strides = [1, 1]} : vector<8x9xf32> to vector<8x8xf32>
    %28 = vector.extract_strided_slice %26 {offsets = [0, 8], sizes = [8, 1], strides = [1, 1]} : vector<8x9xf32> to vector<8x1xf32>
    %29 = vector.shape_cast %27 : vector<8x8xf32> to vector<1x8x8xf32>
    %cst_23 = arith.constant dense<0.000000e+00> : vector<1xf32>
    %30 = vector.multi_reduction <add>, %29, %cst_23 [1, 2] : vector<1x8x8xf32> to vector<1xf32>
    %31 = vector.shape_cast %30 : vector<1xf32> to vector<1x1x1xf32>
    %32 = vector.extract %31[0, 0, 0] : f32 from vector<1x1x1xf32>
    %cst_24 = arith.constant 1.562500e-02 : f32
    %33 = arith.mulf %32, %cst_24 : f32
    %34 = vector.broadcast %33 : f32 to vector<8x8xf32>
    %35 = arith.subf %27, %34 : vector<8x8xf32>
    %36 = vector.broadcast %28 : vector<8x1xf32> to vector<8x8xf32>
    %37 = arith.addf %36, %35 : vector<8x8xf32>
    %c0_25 = arith.constant 0 : index
    %c0_26 = arith.constant 0 : index
    %38 = vector.load %arg9[%c0_25, %c0_26] : memref<8x8xf32, #tpu.memory_space<vmem>>, vector<8x8xf32>
    tpu.vector_store %arg9[%c0_25, %c0_26], %37 {strides = array<i32>} : memref<8x8xf32, #tpu.memory_space<vmem>>, vector<8x8xf32>,
    return
  }
}

</mosaic_0001>

<bundles_post_ra>
// kernel: net_forward.1
= control target key start
LH: loop header
LB: loop body
LE: loop exit
PB: predicated region body
PF: predicated region fallthrough
CT: control target
= control target key end

     0   :  { %14 = vsyncpa [#allocation3], 0  ;;  %s766_s0 = inlined_call_operand.hbm [shape: f32[8,16], index: 0, kind: input, shape index: {}]   ;;  %s767_s1 = inlined_call_operand.hbm [shape: f32[16,32], index: 1, kind: input, shape index: {}]   ;;  %s768_s2 = inlined_call_operand.vmem [shape: f32[1,32], index: 2, kind: input, shape index: {}]   ;;  %s769_s3 = inlined_call_operand.vmem [shape: f32[32,32], index: 3, kind: input, shape index: {}]   ;;  %s770_s4 = inlined_call_operand.vmem [shape: f32[1,32], index: 4, kind: input, shape index: {}]   ;;  %s771_s5 = inlined_call_operand.vmem [shape: f32[32,32], index: 5, kind: input, shape index: {}]   ;;  %s772_s6 = inlined_call_operand.vmem [shape: f32[1,32], index: 6, kind: input, shape index: {}]   ;;  %s773_s7 = inlined_call_operand.vmem [shape: f32[32,9], index: 7, kind: input, shape index: {}]   ;;  %s774_s8 = inlined_call_operand.vmem [shape: f32[1,9], index: 8, kind: input, shape index: {}]   ;;  %s775_s9 = inlined_call_operand.hbm [shape: f32[8,8], index: 9, kind: output, shape index: {}]  }
   0x1   :  { %15 = vsyncpa [#allocation6], 0 }
   0x2   :  { %16 = vsyncpa [#allocation4], 0  ;;  %s607_s30 = smov [#allocation2]   ;;  %s608_s11 = smov [#allocation5]  }
   0x3   :  { %s23_s10 = sshll.u32 %s607_s30, 4  ;;  %s32_s12 = sshll.u32 %s608_s11, 4  ;;  %s24_s10 = int_to_ptr.vmem [resolvable:$true] %s23_s10  ;;  %s666_s12 = int_to_ptr.vmem [resolvable:$true] %s32_s12 }
   0x4   :  { %s535_s15 = scalar_lea.hbm %s766_s0, 128 }
   0x5   :  { %p536_p0 = scmp.ne.s32.totalorder %s766_s0, %s535_s15  ;;  %p539_p1 = scmp.lt.u32.totalorder %s535_s15, %s766_s0 }
   0x7   :  { %p541_p2 = pnand %p539_p1, %p536_p0 }
   0x9   :  { %544 = shalt.err (!%p541_p2)
}
   0xa   :  { %s545_s20 = scalar_lea.vmem %s24_s10, 128  ;;  %p550_p4 = scmp.lt.s32.totalorder %s24_s10, %s24_s10 }
   0xb   :  { %p546_p3 = scmp.ne.s32.totalorder %s24_s10, %s545_s20  ;;  %p551_p5 = scmp.lt.s32.totalorder %s545_s20, %s545_s20 }
   0xd   :  { %p552_p6 = por %p551_p5, %p550_p4 }
   0xf   :  { %p553_p7 = pnand %p552_p6, %p546_p3 }
  0x11   :  { %556 = shalt.err (!%p553_p7)
}
  0x12   :  { %26 = dma.hbm_to_vmem [thread:$0]  %s766_s0, 128, %s24_s10, [#allocation3]  }
  0x13   :  { %s557_s25 = scalar_lea.hbm %s767_s1, 256 }
  0x14   :  { %p558_p8 = scmp.ne.s32.totalorder %s767_s1, %s557_s25  ;;  %p561_p9 = scmp.lt.u32.totalorder %s557_s25, %s767_s1 }
  0x16   :  { %p563_p10 = pnand %p561_p9, %p558_p8 }
  0x18   :  { %566 = shalt.err (!%p563_p10)
}
  0x19   :  { %s567_s30 = scalar_lea.vmem %s666_s12, 256  ;;  %p572_p12 = scmp.lt.s32.totalorder %s666_s12, %s666_s12 }
  0x1a   :  { %p568_p11 = scmp.ne.s32.totalorder %s666_s12, %s567_s30  ;;  %p573_p13 = scmp.lt.s32.totalorder %s567_s30, %s567_s30 }
  0x1c   :  { %p574_p0 = por %p573_p13, %p572_p12 }
  0x1e   :  { %p575_p1 = pnand %p574_p0, %p568_p11 }
  0x20   :  { %578 = shalt.err (!%p575_p1)
}
  0x21   :  { %s609_s0 = smov 128   ;;  %s610_s10 = smov 8  }
  0x22   :  { %38 = dma.hbm_to_vmem [thread:$0]  %s767_s1, 256, %s666_s12, [#allocation6], %s609_s0, %s609_s0, %s610_s10  }
  0x23   :  { %601 = dma.done.wait [#allocation3], 128  }
  0x24   :  { %602 = vsyncadd [#allocation3], 4294967168 }
  0x25   :  { %603 = dma.done.wait [#allocation6], 256  }
  0x26   :  { %604 = vsyncadd [#allocation6], 4294967040  ;;  %v611_v0 = vmov 0.0|0.0   ;;  %vm612_vm0 = vmmov 0   ;;  %v613_v1 = vmov 0.0   ;;  %v60_v2 = vld [vmem:[#allocation5] sm:$0xff] }
  0x27   :  { %502 = vmatprep.subr.bf16.mxu0 %v611_v0  ;;  %466 = vmatprep.mubr.msk.f32.mxu0 %vm612_vm0, %v613_v1  ;;  %v61_v3 = vld [vmem:[#allocation5 + $0x8] sm:$0xff]  ;;  %v63_v5 = vld [vmem:[%s769_s3] sm:$0xff]  ;;  %v64_v6 = vld [vmem:[%s769_s3 + $0x8] sm:$0xff]  ;;  %vm79_vm1 = vcmask 130048   ;;  %vm160_vm2 = vcmask 261120   ;;  %v614_v39 = vmov 8  }
  0x28   :  { %505 = vmatprep.subr.bf16.mxu1 %v611_v0  ;;  %477 = vmatprep.mubr.msk.f32.mxu1 %vm612_vm0, %v613_v1  ;;  %v503_v4 = vpack.c.bf16 %v61_v3, %v60_v2  ;;  %v506_v7 = vpack.c.bf16 %v64_v6, %v63_v5  ;;  %v59_v8 = vld [vmem:[#allocation2] sm:$0xff]  ;;  %v65_v9 = vld [vmem:[%s769_s3 + $0x10] sm:$0xff]  ;;  %v66_v10 = vld [vmem:[%s769_s3 + $0x18] sm:$0xff]  ;;  %vm399_vm3 = vcmask 64512  }
  0x29   :  { %v509_v11 = vpack.c.bf16 %v66_v10, %v65_v9  ;;  %v68_v12 = vld [vmem:[%s771_s5] sm:$0xff]  ;;  %v69_v13 = vld [vmem:[%s771_s5 + $0x8] sm:$0xff]  ;;  %v70_v20 = vld [vmem:[%s771_s5 + $0x10] sm:$0xff]  ;;  %534 = vset.pattern.permute.xlu0 %v614_v39 }
  0x2a   :  { %504 = vmatpush3.bf16.msra.mxu0 %v503_v4  ;;  %507 = vmatpush3.bf16.msra.mxu1 %v506_v7  ;;  %v512_v14 = vpack.c.bf16 %v69_v13, %v68_v12  ;;  %v436_v15 = vld [vmem:[%s768_s2] ss:$0 sm:$0xff]  ;;  %v71_v21 = vld [vmem:[%s771_s5 + $0x18] sm:$0xff]  ;;  %v316_v24 = vld [vmem:[%s773_s7 + $0x8] sm:$0xff] }
  0x2b   :  { %511 = vmatprep.subr.bf16.mxu0 %v611_v0  ;;  %508 = vmatprep.subr.bf16.mxu1 %v611_v0  ;;  %v515_v22 = vpack.c.bf16 %v71_v21, %v70_v20  ;;  %v315_v23 = vld [vmem:[%s773_s7] sm:$0xff]  ;;  %v317_v31 = vld [vmem:[%s773_s7 + $0x10] sm:$0xff]  ;;  %v318_v32 = vld [vmem:[%s773_s7 + $0x18] sm:$0xff] }
  0x2c   :  { %v518_v25 = vpack.c.bf16 %v316_v24, %v315_v23  ;;  %v438_v26 = vld [vmem:[%s770_s4] ss:$0 sm:$0xff]  ;;  %v521_v33 = vpack.c.bf16 %v318_v32, %v317_v31 }
  0x2d   :  { %467 = vmatmul.mubr.msk.f32.vlgmr.msra.gmra.mrb[0].mxu0 %vm79_vm1, %v59_v8  ;;  %v440_v34 = vld [vmem:[%s772_s6] ss:$0 sm:$0xff] }
  0x2e   :  { %488 = vmatprep.mubr.msk.f32.mxu0 %vm612_vm0, %v613_v1  ;;  %510 = vmatpush3.bf16.msra.mxu1 %v509_v11  ;;  %v442_v40 = vld [vmem:[%s774_s8] ss:$0 sm:$0xff]  ;;  %s615_s8 = smov [#allocation7]  }
  0x2f   :  { %517 = vmatprep.subr.bf16.mxu1 %v611_v0  ;;  %513 = vmatpush3.bf16.msra.mxu0 %v512_v14  ;;  %s426_s17 = sshll.u32 %s615_s8, 4  ;;  %s427_s17 = int_to_ptr.vmem [resolvable:$true] %s426_s17 }
  0x30   :  { %514 = vmatprep.subr.bf16.mxu0 %v611_v0  ;;  %s579_s18 = scalar_lea.vmem %s427_s17, 128  ;;  %p584_p3 = scmp.lt.s32.totalorder %s427_s17, %s427_s17 }
  0x31   :  { %p580_p2 = scmp.ne.s32.totalorder %s427_s17, %s579_s18  ;;  %p585_p4 = scmp.lt.s32.totalorder %s579_s18, %s579_s18 }
  0x33   :  { %516 = vmatpush3.bf16.msra.mxu0 %v515_v22  ;;  %p586_p5 = por %p585_p4, %p584_p3 }
  0x35   :  { %p587_p6 = pnand %p586_p5, %p580_p2 }
 0x100   :  { %v149_v16 = vpop.f32.mrb[0].mxu0 }
 0x101   :  { %v150_v17 = vadd.f32 %v436_v15, %v149_v16  ;;  %v468_v18 = vpop.f32.mrb[1].mxu0 }
 0x103   :  { %v153_v19 = vmax.f32 %v150_v17, 0.0 }
 0x105   :  { %478 = vmatmul.mubr.msk.f32.vlgmr.msra.gmra.mrb[0].mxu1 %vm160_vm2, %v153_v19 }
 0x106   :  { %499 = vmatprep.mubr.msk.f32.mxu1 %vm612_vm0, %v613_v1  ;;  %519 = vmatpush3.bf16.msra.mxu1 %v518_v25 }
 0x107   :  { %520 = vmatprep.subr.bf16.mxu1 %v611_v0 }
 0x10a   :  { %522 = vmatpush3.bf16.msra.mxu1 %v521_v33 }
 0x1d8   :  { %v230_v27 = vpop.f32.mrb[0].mxu1 }
 0x1d9   :  { %v231_v28 = vadd.f32 %v438_v26, %v230_v27  ;;  %v479_v29 = vpop.f32.mrb[1].mxu1 }
 0x1db   :  { %v234_v30 = vmax.f32 %v231_v28, 0.0 }
 0x1dd   :  { %489 = vmatmul.mubr.msk.f32.vlgmr.msra.gmra.mrb[2].mxu0 %vm160_vm2, %v234_v30 }
 0x2b0   :  { %v310_v35 = vpop.f32.mrb[2].mxu0 }
 0x2b1   :  { %v311_v36 = vadd.f32 %v440_v34, %v310_v35  ;;  %v490_v37 = vpop.f32.mrb[3].mxu0 }
 0x2b3   :  { %v314_v38 = vmax.f32 %v311_v36, 0.0 }
 0x2b5   :  { %500 = vmatmul.mubr.msk.f32.vlgmr.msra.gmra.mrb[2].mxu1 %vm160_vm2, %v314_v38 }
 0x388   :  { %v395_v41 = vpop.f32.mrb[2].mxu1 }
 0x389   :  { %v396_v42 = vadd.f32 %v442_v40, %v395_v41  ;;  %v501_v43 = vpop.f32.mrb[3].mxu1 }
 0x38b   :  { %v400_v44 = vsel %vm399_vm3, %v396_v42, 0.0 }
 0x38c   :  { %401 = vadd.xlane.f32.xlu0 %v400_v44 }
 0x3a2   :  { %415 = vperm.xlu0 %534, %v396_v42  }
 0x419   :  { %v402_v45 = vpop.xlane.xlu0 %401 }
 0x41a   :  { %v403_v46 = vrot.slane %v402_v45, 4 }
 0x41c   :  { %v404_v47 = vadd.f32 %v403_v46, %v402_v45 }
 0x41e   :  { %v405_v48 = vrot.slane %v404_v47, 2 }
 0x420   :  { %v406_v49 = vadd.f32 %v405_v48, %v404_v47 }
 0x421   :  { %v416_v54 = vpop.permute.xlu0 %415 }
 0x422   :  { %v407_v50 = vrot.slane %v406_v49, 1 }
 0x424   :  { %v408_v51 = vadd.f32 %v407_v50, %v406_v49 }
 0x426   :  { %523 = vpush %v408_v51 }
 0x457   :  { %s524_s6 = spop %523 }
 0x458   :  { %s410_s7 = smul.f32 0.015625, %s524_s6 }
 0x45a   :  { %v411_v52 = vstv %s410_s7 }
 0x45b   :  { %v412_v53 = vsub.f32 %v396_v42, %v411_v52 }
 0x45d   :  { %v418_v55 = vadd.f32 %v416_v54, %v412_v53 }
 0x45f   :  { %419 = vst.msk [vmem:[#allocation7] sm:$0xff] %vm399_vm3, %v418_v55 }
 0x460   :  { %590 = shalt.err (!%p587_p6)
}
 0x461   :  { %s591_s21 = scalar_lea.hbm %s775_s9, 128 }
 0x462   :  { %p592_p7 = scmp.ne.s32.totalorder %s775_s9, %s591_s21  ;;  %p595_p8 = scmp.lt.u32.totalorder %s591_s21, %s775_s9 }
 0x464   :  { %p597_p9 = pnand %p595_p8, %p592_p7 }
 0x466   :  { %600 = shalt.err (!%p597_p9)
}
 0x467   :  { %429 = dma.vmem_to_hbm [thread:$0]  %s427_s17, 128, %s775_s9, [#allocation4]  }
 0x468   :  { %605 = dma.done.wait [#allocation4], 128  }
 0x469   :  { %606 = vsyncadd [#allocation4], 4294967168 }
 0x46a   :  { %433 = vsyncpa [#allocation3], 1 }
 0x46b   :  { %434 = vsyncpa [#allocation6], 1 }
 0x46c   :  { %435 = vsyncpa [#allocation4], 1 }

</bundles_post_ra>
